<compile_context>
chip_gen: v5e
topology: v5e:2x2
jax: 0.10.0
libtpu: 0.0.40
codegen_flags: <defaults>
</compile_context>

<pallas_src>
import jax
import jax.numpy as jnp
from jax.experimental import pallas as pl
from jax.experimental.pallas import tpu as pltpu


def _round_up(v: int, m: int) -> int:
    return ((v + m - 1) // m) * m


def _joint_decoder_kernel(x_ref, w_ref, b_ref, o_ref):
    # x_ref: (TB, D)   batch tile of the graph embedding
    # w_ref: (D, Qo)   pre-transposed weight (resident in VMEM)
    # b_ref: (1, Qo)   bias row
    # o_ref: (TB, Qo)  output tile
    acc = jnp.dot(x_ref[...], w_ref[...], preferred_element_type=jnp.float32)
    acc = acc + b_ref[...].astype(jnp.float32)  # (1, Qo) broadcast over TB rows
    o_ref[...] = acc.astype(o_ref.dtype)


def joint_decoder_forward(graph_embedding, weight, bias, *, block_batch=1024):
    """Pallas implementation of JointDecoder.forward.

    Args:
        graph_embedding: (batch, d_model) array.
        weight: (q_dim, d_model) array (PyTorch nn.Linear weight layout).
        bias: (q_dim,) array.
        block_batch: max rows per batch tile (rounded to a multiple of 8,
            capped by a VMEM budget).

    Returns:
        (batch, q_dim) array of predicted joint angles.
    """
    batch, d_model = graph_embedding.shape
    q_dim, d_model_w = weight.shape
    assert d_model == d_model_w, "d_model mismatch between input and weight"
    assert bias.shape == (q_dim,), "bias shape mismatch"

    # Output lane padding only when q_dim is large enough that masked partial
    # stores would cost more than the extra write bytes.
    if q_dim >= 64 and q_dim % 128 != 0:
        q_out = _round_up(q_dim, 128)
    else:
        q_out = q_dim

    # One-off weight transpose (tiny XLA op) -> kernel RHS is (d_model, q_out),
    # consumed by the MXU with no per-grid-step transpose.
    w_t = weight.T  # (d_model, q_dim)
    b2 = bias.reshape(1, q_dim)
    if q_out != q_dim:
        w_t = jnp.pad(w_t, ((0, 0), (0, q_out - q_dim)))
        b2 = jnp.pad(b2, ((0, 0), (0, q_out - q_dim)))

    # Batch tile: sublane-aligned, capped by block_batch and a conservative
    # VMEM budget (fits the v5e 16 MiB scoped default with headroom).
    bytes_el = 4
    budget = 14 << 20

    def _footprint(t):
        return (2 * t * d_model * bytes_el        # double-buffered x tile
                + 2 * d_model * q_out * bytes_el  # resident W (counted x2, conservative)
                + 2 * q_out * bytes_el            # bias
                + 2 * t * q_out * bytes_el)       # double-buffered out tile

    tb = min(_round_up(block_batch, 8), _round_up(batch, 8))
    tb = max(tb, 8)
    while tb > 8 and _footprint(tb) > budget:
        tb = max(_round_up(tb // 2, 8), 8)

    grid = (pl.cdiv(batch, tb),)  # ragged: no pre-padding of x

    cost = pl.CostEstimate(
        flops=2 * batch * d_model * q_out,
        transcendentals=0,
        bytes_accessed=(batch * d_model + d_model * q_out + q_out + batch * q_out)
        * bytes_el,
    )

    out = pl.pallas_call(
        _joint_decoder_kernel,
        out_shape=jax.ShapeDtypeStruct((batch, q_out), graph_embedding.dtype),
        grid=grid,
        in_specs=[
            # x: tiled over batch (double-buffered by the Pallas pipeline).
            pl.BlockSpec((tb, d_model), lambda i: (i, 0)),
            # W, bias: same block every step -> resident in VMEM (no re-DMA).
            pl.BlockSpec((d_model, q_out), lambda i: (0, 0)),
            pl.BlockSpec((1, q_out), lambda i: (0, 0)),
        ],
        out_specs=pl.BlockSpec((tb, q_out), lambda i: (i, 0)),
        compiler_params=pltpu.CompilerParams(
            dimension_semantics=("parallel",),
        ),
        cost_estimate=cost,
    )(graph_embedding, w_t, b2)

    if q_out != q_dim:
        out = out[:, :q_dim]
    return out


def _reference_forward(graph_embedding, weight, bias):
    # Plain-JAX reference matching torch.nn.Linear semantics.
    return graph_embedding @ weight.T + bias


def _make_inputs(key, batch, d_model, q_dim):
    k_x, k_w, k_b = jax.random.split(key, 3)
    x = jax.random.normal(k_x, (batch, d_model), dtype=jnp.float32)
    bound = 1.0 / (d_model ** 0.5)
    w = jax.random.uniform(k_w, (q_dim, d_model), minval=-bound, maxval=bound,
                           dtype=jnp.float32)
    b = jax.random.uniform(k_b, (q_dim,), minval=-bound, maxval=bound,
                           dtype=jnp.float32)
    return x, w, b


if __name__ == "__main__":
    key = jax.random.PRNGKey(0)
    keys = jax.random.split(key, 3)

    # 1) Module-native small shape: (batch=2, d_model=32) -> (2, q_dim=8).
    x, w, b = _make_inputs(keys[0], batch=2, d_model=32, q_dim=8)
    out = jax.block_until_ready(joint_decoder_forward(x, w, b))
    ref = _reference_forward(x, w, b)
    assert out.shape == (2, 8)
    assert jnp.allclose(out, ref, atol=1e-5, rtol=1e-5), "mismatch (2x32->8)"

    # 2) Ragged grid: batch not a multiple of the tile, multiple grid steps.
    x, w, b = _make_inputs(keys[1], batch=10, d_model=32, q_dim=8)
    out = jax.block_until_ready(joint_decoder_forward(x, w, b, block_batch=8))
    ref = _reference_forward(x, w, b)
    assert out.shape == (10, 8)
    assert jnp.allclose(out, ref, atol=1e-5, rtol=1e-5), "mismatch (ragged batch)"

    # 3) Lane-padded output path (q_dim >= 64, not a multiple of 128).
    x, w, b = _make_inputs(keys[2], batch=16, d_model=32, q_dim=72)
    out = jax.block_until_ready(joint_decoder_forward(x, w, b))
    ref = _reference_forward(x, w, b)
    assert out.shape == (16, 72)
    assert jnp.allclose(out, ref, atol=1e-5, rtol=1e-5), "mismatch (padded q_dim)"

    print("KERNEL_OK")
</pallas_src>

<mosaic_0001>
module attributes {stable_mosaic.version = 11 : i64} {
  func.func @_joint_decoder_kernel(%arg0: i32, %arg1: memref<8x32xf32, #tpu.memory_space<vmem>>, %arg2: memref<32x8xf32, #tpu.memory_space<vmem>>, %arg3: memref<1x8xf32, #tpu.memory_space<vmem>>, %arg4: memref<8x8xf32, #tpu.memory_space<vmem>>) attributes {dimension_semantics = [#tpu.dimension_semantics<parallel>], iteration_bounds = array<i64: 1>, scalar_prefetch = 0 : i64, scratch_operands = 0 : i64, tpu.core_type = #tpu.core_type<tc>, window_params = [{transform_indices = @transform_0, window_bounds = array<i64: 8, 32>}, {pipeline_mode = #tpu.pipeline_mode<synchronous>, transform_indices = @transform_1, window_bounds = array<i64: 32, 8>}, {pipeline_mode = #tpu.pipeline_mode<synchronous>, transform_indices = @transform_2, window_bounds = array<i64: 1, 8>}, {transform_indices = @transform_3, window_bounds = array<i64: 8, 8>}]} {
    %c0 = arith.constant 0 : index
    %c0_0 = arith.constant 0 : index
    %0 = vector.load %arg1[%c0, %c0_0] : memref<8x32xf32, #tpu.memory_space<vmem>>, vector<8x32xf32>
    %c0_1 = arith.constant 0 : index
    %c0_2 = arith.constant 0 : index
    %1 = vector.load %arg2[%c0_1, %c0_2] : memref<32x8xf32, #tpu.memory_space<vmem>>, vector<32x8xf32>
    %cst = arith.constant dense<0.000000e+00> : vector<8x8xf32>
    %2 = tpu.matmul %0, %1, %cst {dimension_numbers = #tpu.dot_dimension_numbers<[1], [0], [0], [1], [0, 0, 1, 1], [], []>} : vector<8x32xf32>, vector<32x8xf32>, vector<8x8xf32> -> vector<8x8xf32>
    %c0_3 = arith.constant 0 : index
    %c0_4 = arith.constant 0 : index
    %3 = vector.load %arg3[%c0_3, %c0_4] : memref<1x8xf32, #tpu.memory_space<vmem>>, vector<1x8xf32>
    %4 = vector.broadcast %3 : vector<1x8xf32> to vector<8x8xf32>
    %5 = arith.addf %2, %4 : vector<8x8xf32>
    %c0_5 = arith.constant 0 : index
    %c0_6 = arith.constant 0 : index
    %6 = vector.load %arg4[%c0_5, %c0_6] : memref<8x8xf32, #tpu.memory_space<vmem>>, vector<8x8xf32>
    tpu.vector_store %arg4[%c0_5, %c0_6], %5 {strides = array<i32>} : memref<8x8xf32, #tpu.memory_space<vmem>>, vector<8x8xf32>,
    return
  }
  func.func @transform_0(%arg0: i32) -> (i32, i32) {
    %c0_i32 = arith.constant 0 : i32
    %c0_i32_0 = arith.constant 0 : i32
    return %arg0, %c0_i32 : i32, i32
  }
  func.func @transform_1(%arg0: i32) -> (i32, i32) {
    %c0_i32 = arith.constant 0 : i32
    %c0_i32_0 = arith.constant 0 : i32
    %c0_i32_1 = arith.constant 0 : i32
    return %c0_i32, %c0_i32_0 : i32, i32
  }
  func.func @transform_2(%arg0: i32) -> (i32, i32) {
    %c0_i32 = arith.constant 0 : i32
    %c0_i32_0 = arith.constant 0 : i32
    %c0_i32_1 = arith.constant 0 : i32
    return %c0_i32, %c0_i32_0 : i32, i32
  }
  func.func @transform_3(%arg0: i32) -> (i32, i32) {
    %c0_i32 = arith.constant 0 : i32
    %c0_i32_0 = arith.constant 0 : i32
    return %arg0, %c0_i32 : i32, i32
  }
}

</mosaic_0001>

<bundles_post_ra>
// kernel: tpu_custom_call.1
= control target key start
LH: loop header
LB: loop body
LE: loop exit
PB: predicated region body
PF: predicated region fallthrough
CT: control target
= control target key end

     0   :  { %8 = vsyncpa [#allocation3], 0  ;;  %vm24_vm0 = vcmask 261120   ;;  %vm48_vm1 = vcmask 64512   ;;  %s143_s0 = inlined_call_operand.vmem [shape: f32[2,32], index: 0, kind: input, shape index: {}]   ;;  %s144_s1 = inlined_call_operand.vmem [shape: f32[32,8], index: 1, kind: input, shape index: {}]   ;;  %s145_s2 = inlined_call_operand.vmem [shape: f32[1,8], index: 2, kind: input, shape index: {}]   ;;  %s146_s3 = inlined_call_operand.hbm [shape: f32[2,8], index: 3, kind: output, shape index: {}]  }
   0x1   :  { %v19_v0 = vld [vmem:[%s144_s1 + $0x18] sm:$0xff]  ;;  %v18_v1 = vld [vmem:[%s144_s1 + $0x10] sm:$0xff]  ;;  %v17_v2 = vld [vmem:[%s144_s1 + $0x8] sm:$0xff] }
   0x2   :  { %40 = vmatpush.msra.mxu0 %v19_v0  ;;  %v16_v3 = vld [vmem:[%s144_s1] sm:$0xff] }
   0x3   :  { %v15_v4 = vld [vmem:[%s143_s0] sm:$0xff] }
   0x4   :  { %41 = vmatpush.msra.mxu0 %v18_v1  ;;  %v72_v5 = vld [vmem:[%s145_s2] ss:$0 sm:$0xff] }
   0x6   :  { %42 = vmatpush.msra.mxu0 %v17_v2 }
   0x8   :  { %43 = vmatpush.msra.mxu0 %v16_v3 }
   0x9   :  { %68 = vmatmul.msk.f32.vlgmr.msra.gmra.mxu0 %vm24_vm0, %v15_v4 }
  0x86   :  { %v45_v6 = vpop.f32.mrf.mxu0 }
  0x87   :  { %v46_v7 = vadd.f32 %v72_v5, %v45_v6 }
  0x89   :  { %49 = vst.msk [vmem:[#allocation2] sm:$0xff] %vm48_vm1, %v46_v7 }
  0x8a   :  { %53 = vsyncadd [#allocation3], 96  ;;  %s56_s1 = sshll.u32 %s146_s3, 4  ;;  %s99_s26 = smov [#allocation2]   ;;  %s57_s1 = int_to_ptr.hbm [resolvable:$true] %s56_s1 }
  0x8b   :  { %s54_s27 = sshll.u32 %s99_s26, 4  ;;  %s100_s0 = smov 32   ;;  %s55_s27 = int_to_ptr.vmem [resolvable:$true] %s54_s27 }
  0x8c   :  { %s101_s28 = smov 2  }
  0x8d   :  { %62 = dma.vmem_to_hbm [thread:$0]  %s55_s27, 32, %s57_s1, [#allocation3], %s100_s0, %s100_s0, %s101_s28  }
  0x8e   :  { %97 = dma.done.wait [#allocation3], 128  }
  0x8f   :  { %98 = vsyncadd [#allocation3], 4294967168 }
  0x90   :  { %67 = vsyncpa [#allocation3], 1 }

</bundles_post_ra>
